<compile_context>
chip_gen: v7x
topology: tpu7x:2x2x1
jax: 0.10.0
libtpu: 0.0.40
codegen_flags: <defaults>
</compile_context>

<pallas_src>
import functools

import jax
import jax.numpy as jnp
from jax.experimental import pallas as pl
from jax.experimental.pallas import tpu as pltpu


# ----------------------------- activation ---------------------------------
def _apply_activation(y, activation):
    a = activation.lower()
    if a == "gelu":
        return jax.nn.gelu(y)
    if a == "silu":
        return jax.nn.silu(y)
    if a == "selu":
        return jax.nn.selu(y)
    if a == "hardswish":
        return jax.nn.hard_swish(y)
    if a == "leakyrelu":
        return jnp.where(y >= 0, y, 0.01 * y)
    if a == "leakyrelu0.2":
        return jnp.where(y >= 0, y, 0.2 * y)
    if a == "rrelu":
        # eval-mode RReLU == leaky relu with slope (lower+upper)/2
        return jnp.where(y >= 0, y, ((1.0 / 8.0 + 1.0 / 3.0) / 2.0) * y)
    return jnp.maximum(y, 0.0)  # relu (default)


# ------------------------------- kernel -----------------------------------
def _pos_extraction_kernel(x_ref, w1_ref, b1_ref, w2_ref, b2_ref, o_ref, *,
                           blocks, activation):
    # x_ref : (C, tl)               lane-dense tile (channels on sublanes, L on lanes)
    # w1_ref: (blocks, C_mid, C)    conv1 weights with BN1 scale folded in
    # b1_ref: (blocks, C_mid, 1)    f32 folded shifts (conv1 bias + BN1)
    # w2_ref: (blocks, C, C_mid)    conv2 weights with BN2 scale folded in
    # b2_ref: (blocks, C, 1)        f32 folded shifts (conv2 bias + BN2)
    # o_ref : (C, tl)
    x = x_ref[...]
    for b in range(blocks):  # static, unrolled: the tile stays VMEM-resident
        h = jnp.dot(w1_ref[b], x, preferred_element_type=jnp.float32)       # (C_mid, tl) f32
        h = _apply_activation(h + b1_ref[b], activation)
        y = jnp.dot(w2_ref[b], h.astype(w2_ref.dtype),
                    preferred_element_type=jnp.float32)                     # (C, tl) f32
        y = y + b2_ref[b] + x.astype(jnp.float32)                           # residual in f32
        x = _apply_activation(y, activation).astype(o_ref.dtype)
    o_ref[...] = x


# ------------------------------ wrappers -----------------------------------
def _fold_conv_bn(weight, bias, gamma, beta, mean, var, eps):
    """Fold eval-mode BN into a pointwise conv: returns (W_scaled, shift[:,None])."""
    inv_std = gamma / jnp.sqrt(var + eps)          # (C_out,)
    w = weight[:, :, 0] * inv_std[:, None]         # (C_out, C_in)
    shift = (bias - mean) * inv_std + beta         # (C_out,)
    return w, shift[:, None]


def _round_up(x, m):
    return ((x + m - 1) // m) * m


def _vmem_budget_bytes():
    """Generation-aware VMEM budget and matching vmem_limit_bytes."""
    try:
        kind = jax.devices()[0].device_kind.lower()
    except Exception:  # pragma: no cover - CPU fallback
        kind = ""
    if "v5 lite" in kind or "v5e" in kind or "v5lite" in kind:
        budget = 12 * 1024 * 1024          # v5e: 16 MiB scoped default, keep headroom
    else:
        budget = 24 * 1024 * 1024          # v6e (128 MiB) / v7x (64 MiB physical)
    return budget, budget + 8 * 1024 * 1024


def _choose_lane_tile(N, C, C_mid, L, blocks, itemsize, budget, max_tl=2048):
    """Pick lane tile tl (multiple of 128) and padded length l_pad = k * tl."""
    l128 = _round_up(max(L, 128), 128)
    # VMEM accounting:
    #   * weights + biases, double-buffered by the pipeline (constant index_map
    #     blocks are only DMA'd once, but still get 2 buffers each by default)
    w_bytes = 2 * blocks * (2 * C * C_mid * itemsize + (C + C_mid) * 4)
    #   * per lane-column: double-buffered x & out tiles + f32 intermediates h, y
    #     + the carried x copy inside the block loop
    per_col = 2 * 2 * C * itemsize + 2 * max(C, C_mid) * 4 + C * itemsize
    avail = budget - w_bytes
    if avail <= per_col * 128:
        tl_cap = 128
    else:
        tl_cap = max(128, min(max_tl, (avail // per_col) // 128 * 128))
    n_tiles = pl.cdiv(l128, tl_cap)
    # Keep >= 2 grid programs so v7x megacore can shard across both TensorCores.
    while N * n_tiles < 2 and l128 // n_tiles >= 256:
        n_tiles += 1
    tl = _round_up(pl.cdiv(l128, n_tiles), 128)
    return tl, n_tiles * tl


def pos_extraction(x, blocks_params, *, activation="relu", eps=1e-5,
                   compute_dtype=None):
    """PosExtraction forward. x: (N, C, L); blocks_params: list of per-block dicts.

    compute_dtype: optional storage/MXU dtype for x and the folded weights
    (e.g. jnp.bfloat16).  Accumulation, bias, residual and activation are f32.
    """
    N, C, L = x.shape
    dt = jnp.dtype(compute_dtype) if compute_dtype is not None else x.dtype
    blocks = len(blocks_params)

    # Fold eval-mode BN into the pointwise convs and stack per-block params.
    w1s, b1s, w2s, b2s = [], [], [], []
    for bp in blocks_params:
        w1, s1 = _fold_conv_bn(*bp["net1"], eps)
        w2, s2 = _fold_conv_bn(*bp["net2"], eps)
        w1s.append(w1); b1s.append(s1); w2s.append(w2); b2s.append(s2)
    w1s = jnp.stack(w1s).astype(dt)                 # (blocks, C_mid, C)
    b1s = jnp.stack(b1s).astype(jnp.float32)        # (blocks, C_mid, 1)
    w2s = jnp.stack(w2s).astype(dt)                 # (blocks, C, C_mid)
    b2s = jnp.stack(b2s).astype(jnp.float32)        # (blocks, C, 1)
    C_mid = int(w1s.shape[1])

    budget, vmem_limit = _vmem_budget_bytes()
    tl, l_pad = _choose_lane_tile(N, C, C_mid, L, blocks, dt.itemsize, budget)

    xc = x.astype(dt)
    if l_pad != L:
        # Pointwise over L, so padded columns never contaminate real output.
        xc = jnp.pad(xc, ((0, 0), (0, 0), (0, l_pad - L)))

    kernel = functools.partial(_pos_extraction_kernel, blocks=blocks,
                               activation=activation)
    out = pl.pallas_call(
        kernel,
        out_shape=jax.ShapeDtypeStruct((N, C, l_pad), dt),
        grid_spec=pltpu.PrefetchScalarGridSpec(
            num_scalar_prefetch=0,
            grid=(N, l_pad // tl),
            in_specs=[
                pl.BlockSpec((None, C, tl), lambda n, l: (n, 0, l)),
                pl.BlockSpec((blocks, C_mid, C), lambda n, l: (0, 0, 0)),
                pl.BlockSpec((blocks, C_mid, 1), lambda n, l: (0, 0, 0)),
                pl.BlockSpec((blocks, C, C_mid), lambda n, l: (0, 0, 0)),
                pl.BlockSpec((blocks, C, 1), lambda n, l: (0, 0, 0)),
            ],
            out_specs=pl.BlockSpec((None, C, tl), lambda n, l: (n, 0, l)),
        ),
        compiler_params=pltpu.CompilerParams(
            dimension_semantics=("parallel", "parallel"),
            vmem_limit_bytes=vmem_limit),
    )(xc, w1s, b1s, w2s, b2s)

    if l_pad != L:
        out = out[:, :, :L]
    return out.astype(x.dtype)


# ------------------------------ reference ----------------------------------
def _ref_block(x, p, eps=1e-5):
    w1, b1, g1, be1, m1, v1 = p["net1"]
    w2, b2, g2, be2, m2, v2 = p["net2"]
    h = jnp.einsum("oc,ncl->nol", w1[:, :, 0], x) + b1[None, :, None]
    h = (h - m1[None, :, None]) / jnp.sqrt(v1[None, :, None] + eps)
    h = h * g1[None, :, None] + be1[None, :, None]
    h = jnp.maximum(h, 0.0)
    y = jnp.einsum("oc,ncl->nol", w2[:, :, 0], h) + b2[None, :, None]
    y = (y - m2[None, :, None]) / jnp.sqrt(v2[None, :, None] + eps)
    y = y * g2[None, :, None] + be2[None, :, None]
    return jnp.maximum(y + x, 0.0)


def _ref_pos_extraction(x, blocks_params, eps=1e-5):
    y = x
    for bp in blocks_params:
        y = _ref_block(y, bp, eps)
    return y


# -------------------------------- main --------------------------------------
if __name__ == "__main__":
    # small shapes consistent with PosExtraction: batch=2, channels=32, L=16,
    # blocks=2, res_expansion=1.0, groups=1, activation='relu'
    N, C, L = 2, 32, 16
    blocks = 2
    res_expansion = 1.0
    C_mid = int(C * res_expansion)

    key = jax.random.PRNGKey(0)

    def make_conv_bn(key, c_out, c_in):
        kw, kb, kg, kbe, km, kv = jax.random.split(key, 6)
        weight = 0.1 * jax.random.normal(kw, (c_out, c_in, 1), dtype=jnp.float32)
        bias = 0.1 * jax.random.normal(kb, (c_out,), dtype=jnp.float32)
        gamma = 1.0 + 0.1 * jax.random.normal(kg, (c_out,), dtype=jnp.float32)
        beta = 0.1 * jax.random.normal(kbe, (c_out,), dtype=jnp.float32)
        mean = 0.1 * jax.random.normal(km, (c_out,), dtype=jnp.float32)
        var = 1.0 + 0.1 * jax.random.uniform(kv, (c_out,), dtype=jnp.float32)
        return (weight, bias, gamma, beta, mean, var)

    kx, kp = jax.random.split(key)
    x = jax.random.normal(kx, (N, C, L), dtype=jnp.float32)

    blocks_params = []
    for b in range(blocks):
        k1, k2, kp = jax.random.split(kp, 3)
        blocks_params.append({
            "net1": make_conv_bn(k1, C_mid, C),
            "net2": make_conv_bn(k2, C, C_mid),
        })

    ref = _ref_pos_extraction(x, blocks_params)

    # f32 data path (exact check)
    out = pos_extraction(x, blocks_params, activation="relu")
    out = jax.block_until_ready(out)
    assert out.shape == (N, C, L)
    assert jnp.allclose(out, ref, atol=1e-4, rtol=1e-4), (
        float(jnp.max(jnp.abs(out - ref))))

    # bf16 data path (memory-bound fast path; f32 accumulation, loose tolerance)
    out_bf16 = pos_extraction(x, blocks_params, activation="relu",
                              compute_dtype=jnp.bfloat16)
    out_bf16 = jax.block_until_ready(out_bf16)
    assert out_bf16.shape == (N, C, L)
    assert jnp.allclose(out_bf16.astype(jnp.float32), ref, atol=1e-1, rtol=1e-1), (
        float(jnp.max(jnp.abs(out_bf16.astype(jnp.float32) - ref))))

    print("KERNEL_OK")
</pallas_src>

<mosaic_0001>
module attributes {stable_mosaic.version = 11 : i64} {
  func.func @_pos_extraction_kernel(%arg0: i32, %arg1: i32, %arg2: memref<1x32x128xf32, #tpu.memory_space<vmem>>, %arg3: memref<2x32x32xf32, #tpu.memory_space<vmem>>, %arg4: memref<2x32x1xf32, #tpu.memory_space<vmem>>, %arg5: memref<2x32x32xf32, #tpu.memory_space<vmem>>, %arg6: memref<2x32x1xf32, #tpu.memory_space<vmem>>, %arg7: memref<1x32x128xf32, #tpu.memory_space<vmem>>) attributes {dimension_semantics = [#tpu.dimension_semantics<parallel>, #tpu.dimension_semantics<parallel>], iteration_bounds = array<i64: 2, 1>, scalar_prefetch = 0 : i64, scratch_operands = 0 : i64, tpu.core_type = #tpu.core_type<tc>, window_params = [{transform_indices = @transform_0, window_bounds = array<i64: 1, 32, 128>}, {pipeline_mode = #tpu.pipeline_mode<synchronous>, transform_indices = @transform_1, window_bounds = array<i64: 2, 32, 32>}, {pipeline_mode = #tpu.pipeline_mode<synchronous>, transform_indices = @transform_2, window_bounds = array<i64: 2, 32, 1>}, {pipeline_mode = #tpu.pipeline_mode<synchronous>, transform_indices = @transform_3, window_bounds = array<i64: 2, 32, 32>}, {pipeline_mode = #tpu.pipeline_mode<synchronous>, transform_indices = @transform_4, window_bounds = array<i64: 2, 32, 1>}, {transform_indices = @transform_5, window_bounds = array<i64: 1, 32, 128>}]} {
    %c0 = arith.constant 0 : index
    %c0_0 = arith.constant 0 : index
    %c0_1 = arith.constant 0 : index
    %0 = vector.load %arg2[%c0, %c0_0, %c0_1] : memref<1x32x128xf32, #tpu.memory_space<vmem>>, vector<1x32x128xf32>
    %1 = vector.shape_cast %0 : vector<1x32x128xf32> to vector<32x128xf32>
    %c0_2 = arith.constant 0 : index
    %c0_3 = arith.constant 0 : index
    %c0_4 = arith.constant 0 : index
    %2 = vector.load %arg3[%c0_2, %c0_3, %c0_4] : memref<2x32x32xf32, #tpu.memory_space<vmem>>, vector<1x32x32xf32>
    %3 = vector.shape_cast %2 : vector<1x32x32xf32> to vector<32x32xf32>
    %cst = arith.constant dense<0.000000e+00> : vector<32x128xf32>
    %4 = tpu.matmul %3, %1, %cst {dimension_numbers = #tpu.dot_dimension_numbers<[1], [0], [0], [1], [0, 0, 1, 1], [], []>} : vector<32x32xf32>, vector<32x128xf32>, vector<32x128xf32> -> vector<32x128xf32>
    %c0_5 = arith.constant 0 : index
    %c0_6 = arith.constant 0 : index
    %c0_7 = arith.constant 0 : index
    %5 = vector.load %arg4[%c0_5, %c0_6, %c0_7] : memref<2x32x1xf32, #tpu.memory_space<vmem>>, vector<1x32x1xf32>
    %6 = vector.shape_cast %5 : vector<1x32x1xf32> to vector<32x1xf32>
    %7 = vector.broadcast %6 : vector<32x1xf32> to vector<32x128xf32>
    %8 = arith.addf %4, %7 : vector<32x128xf32>
    %cst_8 = arith.constant 0.000000e+00 : f32
    %9 = vector.broadcast %cst_8 : f32 to vector<32x128xf32>
    %10 = arith.maximumf %8, %9 : vector<32x128xf32>
    %c0_9 = arith.constant 0 : index
    %c0_10 = arith.constant 0 : index
    %c0_11 = arith.constant 0 : index
    %11 = vector.load %arg5[%c0_9, %c0_10, %c0_11] : memref<2x32x32xf32, #tpu.memory_space<vmem>>, vector<1x32x32xf32>
    %12 = vector.shape_cast %11 : vector<1x32x32xf32> to vector<32x32xf32>
    %cst_12 = arith.constant dense<0.000000e+00> : vector<32x128xf32>
    %13 = tpu.matmul %12, %10, %cst_12 {dimension_numbers = #tpu.dot_dimension_numbers<[1], [0], [0], [1], [0, 0, 1, 1], [], []>} : vector<32x32xf32>, vector<32x128xf32>, vector<32x128xf32> -> vector<32x128xf32>
    %c0_13 = arith.constant 0 : index
    %c0_14 = arith.constant 0 : index
    %c0_15 = arith.constant 0 : index
    %14 = vector.load %arg6[%c0_13, %c0_14, %c0_15] : memref<2x32x1xf32, #tpu.memory_space<vmem>>, vector<1x32x1xf32>
    %15 = vector.shape_cast %14 : vector<1x32x1xf32> to vector<32x1xf32>
    %16 = vector.broadcast %15 : vector<32x1xf32> to vector<32x128xf32>
    %17 = arith.addf %13, %16 : vector<32x128xf32>
    %18 = arith.addf %17, %1 : vector<32x128xf32>
    %cst_16 = arith.constant 0.000000e+00 : f32
    %19 = vector.broadcast %cst_16 : f32 to vector<32x128xf32>
    %20 = arith.maximumf %18, %19 : vector<32x128xf32>
    %c1 = arith.constant 1 : index
    %c0_17 = arith.constant 0 : index
    %c0_18 = arith.constant 0 : index
    %21 = vector.load %arg3[%c1, %c0_17, %c0_18] : memref<2x32x32xf32, #tpu.memory_space<vmem>>, vector<1x32x32xf32>
    %22 = vector.shape_cast %21 : vector<1x32x32xf32> to vector<32x32xf32>
    %cst_19 = arith.constant dense<0.000000e+00> : vector<32x128xf32>
    %23 = tpu.matmul %22, %20, %cst_19 {dimension_numbers = #tpu.dot_dimension_numbers<[1], [0], [0], [1], [0, 0, 1, 1], [], []>} : vector<32x32xf32>, vector<32x128xf32>, vector<32x128xf32> -> vector<32x128xf32>
    %c1_20 = arith.constant 1 : index
    %c0_21 = arith.constant 0 : index
    %c0_22 = arith.constant 0 : index
    %24 = vector.load %arg4[%c1_20, %c0_21, %c0_22] : memref<2x32x1xf32, #tpu.memory_space<vmem>>, vector<1x32x1xf32>
    %25 = vector.shape_cast %24 : vector<1x32x1xf32> to vector<32x1xf32>
    %26 = vector.broadcast %25 : vector<32x1xf32> to vector<32x128xf32>
    %27 = arith.addf %23, %26 : vector<32x128xf32>
    %cst_23 = arith.constant 0.000000e+00 : f32
    %28 = vector.broadcast %cst_23 : f32 to vector<32x128xf32>
    %29 = arith.maximumf %27, %28 : vector<32x128xf32>
    %c1_24 = arith.constant 1 : index
    %c0_25 = arith.constant 0 : index
    %c0_26 = arith.constant 0 : index
    %30 = vector.load %arg5[%c1_24, %c0_25, %c0_26] : memref<2x32x32xf32, #tpu.memory_space<vmem>>, vector<1x32x32xf32>
    %31 = vector.shape_cast %30 : vector<1x32x32xf32> to vector<32x32xf32>
    %cst_27 = arith.constant dense<0.000000e+00> : vector<32x128xf32>
    %32 = tpu.matmul %31, %29, %cst_27 {dimension_numbers = #tpu.dot_dimension_numbers<[1], [0], [0], [1], [0, 0, 1, 1], [], []>} : vector<32x32xf32>, vector<32x128xf32>, vector<32x128xf32> -> vector<32x128xf32>
    %c1_28 = arith.constant 1 : index
    %c0_29 = arith.constant 0 : index
    %c0_30 = arith.constant 0 : index
    %33 = vector.load %arg6[%c1_28, %c0_29, %c0_30] : memref<2x32x1xf32, #tpu.memory_space<vmem>>, vector<1x32x1xf32>
    %34 = vector.shape_cast %33 : vector<1x32x1xf32> to vector<32x1xf32>
    %35 = vector.broadcast %34 : vector<32x1xf32> to vector<32x128xf32>
    %36 = arith.addf %32, %35 : vector<32x128xf32>
    %37 = arith.addf %36, %20 : vector<32x128xf32>
    %cst_31 = arith.constant 0.000000e+00 : f32
    %38 = vector.broadcast %cst_31 : f32 to vector<32x128xf32>
    %39 = arith.maximumf %37, %38 : vector<32x128xf32>
    %c0_32 = arith.constant 0 : index
    %c0_33 = arith.constant 0 : index
    %c0_34 = arith.constant 0 : index
    %40 = vector.load %arg7[%c0_32, %c0_33, %c0_34] : memref<1x32x128xf32, #tpu.memory_space<vmem>>, vector<1x32x128xf32>
    %41 = vector.shape_cast %40 : vector<1x32x128xf32> to vector<32x128xf32>
    %42 = vector.shape_cast %39 : vector<32x128xf32> to vector<1x32x128xf32>
    tpu.vector_store %arg7[%c0_32, %c0_33, %c0_34], %42 {strides = array<i32>} : memref<1x32x128xf32, #tpu.memory_space<vmem>>, vector<1x32x128xf32>,
    return
  }
  func.func @transform_0(%arg0: i32, %arg1: i32) -> (i32, i32, i32) {
    %c0_i32 = arith.constant 0 : i32
    %c0_i32_0 = arith.constant 0 : i32
    return %arg0, %c0_i32, %arg1 : i32, i32, i32
  }
  func.func @transform_1(%arg0: i32, %arg1: i32) -> (i32, i32, i32) {
    %c0_i32 = arith.constant 0 : i32
    %c0_i32_0 = arith.constant 0 : i32
    %c0_i32_1 = arith.constant 0 : i32
    %c0_i32_2 = arith.constant 0 : i32
    return %c0_i32, %c0_i32_0, %c0_i32_1 : i32, i32, i32
  }
  func.func @transform_2(%arg0: i32, %arg1: i32) -> (i32, i32, i32) {
    %c0_i32 = arith.constant 0 : i32
    %c0_i32_0 = arith.constant 0 : i32
    %c0_i32_1 = arith.constant 0 : i32
    %c0_i32_2 = arith.constant 0 : i32
    return %c0_i32, %c0_i32_0, %c0_i32_1 : i32, i32, i32
  }
  func.func @transform_3(%arg0: i32, %arg1: i32) -> (i32, i32, i32) {
    %c0_i32 = arith.constant 0 : i32
    %c0_i32_0 = arith.constant 0 : i32
    %c0_i32_1 = arith.constant 0 : i32
    %c0_i32_2 = arith.constant 0 : i32
    return %c0_i32, %c0_i32_0, %c0_i32_1 : i32, i32, i32
  }
  func.func @transform_4(%arg0: i32, %arg1: i32) -> (i32, i32, i32) {
    %c0_i32 = arith.constant 0 : i32
    %c0_i32_0 = arith.constant 0 : i32
    %c0_i32_1 = arith.constant 0 : i32
    %c0_i32_2 = arith.constant 0 : i32
    return %c0_i32, %c0_i32_0, %c0_i32_1 : i32, i32, i32
  }
  func.func @transform_5(%arg0: i32, %arg1: i32) -> (i32, i32, i32) {
    %c0_i32 = arith.constant 0 : i32
    %c0_i32_0 = arith.constant 0 : i32
    return %arg0, %c0_i32, %arg1 : i32, i32, i32
  }
}

</mosaic_0001>

<bundles_post_ra>
// kernel: tpu_custom_call.1
= control target key start
LH: loop header
LB: loop body
LE: loop exit
PB: predicated region body
PF: predicated region fallthrough
CT: control target
= control target key end

     0   :  { %10 = vsyncpa [#allocation3], 0  ;;  %s1573_s0 = inlined_call_operand.vmem [shape: f32[2,32,128], index: 0, kind: input, shape index: {}]   ;;  %s1574_s1 = inlined_call_operand.vmem [shape: f32[2,32,32], index: 1, kind: input, shape index: {}]   ;;  %s1575_s2 = inlined_call_operand.vmem [shape: f32[2,32,1], index: 2, kind: input, shape index: {}]   ;;  %s1576_s3 = inlined_call_operand.hbm [shape: f32[2,32,32], index: 3, kind: input, shape index: {}]   ;;  %s1577_s4 = inlined_call_operand.vmem [shape: f32[2,32,1], index: 4, kind: input, shape index: {}]   ;;  %s1578_s5 = inlined_call_operand.hbm [shape: f32[2,32,128], index: 5, kind: output, shape index: {}]  }
   0x1   :  { %11 = vsyncpa [#allocation4], 0 }
   0x2   :  { %13 = vsyncpa [#allocation4 + $0x1], 0  ;;  %s1292_s18 = smov 0   ;;  %s1294_s19 = smov 0  }
   0x3   :  { %s1296_s20 = smov 0   ;;  %s1298_s21 = smov 0  }
   0x4   :  { %s1300_s22 = smov 0   ;;  %s1302_s23 = smov 0  }
   0x5 LB: > { %s905_s24 = sadd.s32 4294967295, %s1253_s23   ;;  %s906_s25 = sadd.s32 4294967294, %s1253_s23   ;;  %s1253_s23 = sphi %s1302_s23, %s19_s23   ;;  %s1249_s22 = sphi %s1300_s22, %s1596_s22   ;;  %s1245_s21 = sphi %s1298_s21, %s1595_s21   ;;  %s1241_s20 = sphi %s1296_s20, %s1594_s20   ;;  %s1237_s19 = sphi %s1294_s19, %s1593_s19   ;;  %s1233_s18 = sphi %s1292_s18, %s1592_s18  }
   0x6   : > { %s31_s26 = sadd.s32 1, %s1249_s22  ;;  %s152_s27 = sadd.s32 1, %s1241_s20 }
   0x7   : > { %p33_p0 = scmp.ge.s32.totalorder %s31_s26, 2  ;;  %p162_p1 = scmp.ne.s32.totalorder %s1241_s20, %s1237_s19 }
   0x8   : > { %p163_p2 = scmp.eq.s32.totalorder %s905_s24, 1  ;;  %p168_p3 = scmp.ne.s32.totalorder %s1237_s19, %s1233_s18 }
   0x9   : > { %s1598_s26 = smov (%p33_p0, %s31_s26), 0  ;;  %p169_p5 = scmp.eq.s32.totalorder %s906_s25, 1 }
   0xa   : > { %p1332_p4 = por %p163_p2, %p162_p1  ;;  %s147_s29 = ssub.s32 %s1249_s22, %s1598_s26 }
   0xb   : > { %p907_p6 = scmp.ge.s32.totalorder %s1253_s23, 1  ;;  %p150_p7 = scmp.eq.s32.totalorder %s147_s29, 0 }
   0xc   : > { %s1583_s28 = scalar_select %p1332_p4, 1, 0 }
   0xd   : > { %p1339_p8 = por %p169_p5, %p168_p3  ;;  %p176_p9 = scmp.lt.s32.totalorder %s1253_s23, 3 }
   0xe   : > { %s1345_s6 = scalar_select %p150_p7, %s1241_s20, %s152_s27  }
   0xf   : > { %s1584_s30 = scalar_select %p1339_p8, 1, 0 }
  0x10   : > { %p1347_p10 = pnand %p907_p6, %p176_p9  ;;  %p1351_p11 = scmp.eq.s32.totalorder %s905_s24, 0 }
  0x11   : > { %s1255_s9 = smov [#allocation2]   ;;  %s1143_s14 = scalar_lea.hbm %s1576_s3, 1024 }
  0x12   : > { %s1585_s7 = scalar_select %p1347_p10, 1, 0 }
  0x13   : > { %s1586_s8 = scalar_select %p1351_p11, 1, 0 }
  0x14   : > { %p1076_p12 = pneg %p1347_p10  ;;  %s194_s10 = sshll.u32 %s1255_s9, 4  ;;  %s195_s10 = int_to_ptr.vmem [resolvable:$true] %s194_s10 }
  0x15   : > { %p1144_p0 = scmp.ne.s32.totalorder %s1576_s3, %s1143_s14  ;;  %p1150_p5 = scmp.lt.u32.totalorder %s1143_s14, %s1576_s3 }
  0x16   : > { %p1359_p13 = pnand %p1351_p11, %p1076_p12 }
  0x18   : > { %p1145_p1 = pneg %p1359_p13 }
  0x1a   : > { %p1146_p2 = pnand %p1145_p1, %p1144_p0 }
  0x1c   : > { %p1147_p3 = pneg %p1146_p2 }
  0x1e   : > { %p1152_p6 = pnand %p1150_p5, %p1147_p3 }
  0x20   : > { %1155 = shalt.err (!%p1152_p6)
}
  0x21   : > { %s1156_s25 = scalar_lea.vmem %s195_s10, 1024  ;;  %p1164_p8 = scmp.lt.s32.totalorder %s195_s10, %s195_s10 }
  0x22   : > { %p1157_p7 = scmp.ne.s32.totalorder %s195_s10, %s1156_s25  ;;  %p1165_p4 = scmp.lt.s32.totalorder %s1156_s25, %s1156_s25 }
  0x24   : > { %p1159_p9 = pnand %p1157_p7, %p1145_p1  ;;  %p1166_p11 = por %p1165_p4, %p1164_p8 }
  0x26   : > { %p1160_p12 = pneg %p1159_p9 }
  0x28   : > { %p1167_p10 = pnand %p1166_p11, %p1160_p12 }
  0x2a   : > { %1170 = shalt.err (!%p1167_p10)
}
  0x2b   : > { %s1256_s27 = smov 128   ;;  %s1257_s29 = smov 8  }
  0x2c   : > { %1079 = dma.hbm_to_vmem [thread:$0]  (!%p1359_p13), %s1576_s3, 1024, %s195_s10, [#allocation3], %s1256_s27, %s1256_s27, %s1257_s29  }
  0x2d   : > { %p1588_p0 = scmp.ne.s32.totalorder %s1585_s7, 0 }
  0x2e   : > { %p1589_p2 = scmp.ne.s32.totalorder (!%p1588_p0), %s1586_s8, 0 }
  0x2f   : > { %224 = sbr.rel (%p1588_p0) target bundleno = 993 (0x3e1), region = 40 }
  0x36   : > { %1224 = dma.done.wait (%p1589_p2), [#allocation3], 1024  }
  0x37   : > { %1226 = vsyncadd (%p1589_p2), [#allocation3], 4294966272  ;;  %p255_p4 = scmp.lt.s32.totalorder %s1245_s21, 1  ;;  %v1258_v0 = vmov 0   ;;  %vm295_vm0 = vcmask 261120   ;;  %v267_v6 = vld [vmem:[%s1574_s1] sm:$0xff] }
  0x38   : > { %1141 = vset.pattern.permute.xlu0 %v1258_v0  ;;  %1142 = vset.pattern.permute.xlu1 %v1258_v0  ;;  %v271_v8 = vld [vmem:[%s1575_s2] sm:$0xff]  ;;  %v273_v9 = vld [vmem:[%s1575_s2 + $0x10] sm:$0xff]  ;;  %v272_v10 = vld [vmem:[%s1575_s2 + $0x8] sm:$0xff]  ;;  %s252_s17 = sand.u32 1, %s1237_s19   ;;  %s949_s29 = sshll.u32 %s1245_s21, 9 }
  0x39   : > { %s256_s11 = scalar_select %p255_p4, %s1245_s21, 1  ;;  %990 = vmatprep.mubr.msk.f32.mxu0 %vm295_vm0, %v267_v6  ;;  %277 = vperm.xlu0 %1141, %v271_v8   ;;  %v274_v11 = vld [vmem:[%s1575_s2 + $0x18] sm:$0xff]  ;;  %v268_v12 = vld [vmem:[%s1574_s1 + $0x8] sm:$0xff]  ;;  %v401_v13 = vld [vmem:[%s1577_s4] sm:$0xff] }
  0x3a   : > { %287 = vperm.xlu1 %1142, %v273_v9   ;;  %v269_v14 = vld [vmem:[%s1574_s1 + $0x10] sm:$0xff]  ;;  %v402_v15 = vld [vmem:[%s1577_s4 + $0x8] sm:$0xff]  ;;  %v270_v16 = vld [vmem:[%s1574_s1 + $0x18] sm:$0xff]  ;;  %s912_s24 = sshll.u32 %s252_s17, 5  ;;  %s1527_s21 = scalar_lea.sflag [#allocation4], %s252_s17 }
  0x3b   : > { %s948_s13 = sshll.u32 %s256_s11, 5  ;;  %v403_v17 = vld [vmem:[%s1577_s4 + $0x10] sm:$0xff]  ;;  %v404_v18 = vld [vmem:[%s1577_s4 + $0x18] sm:$0xff]  ;;  %v927_v19 = vld [vmem:[%s1575_s2 + $0x20] sm:$0xff]  ;;  %s254_s25 = scalar_lea.vmem [#allocation5], %s912_s24 }
  0x3c   : > { %s262_s10 = scalar_lea.vmem %s1573_s0, %s948_s13  ;;  %v928_v20 = vld [vmem:[%s1575_s2 + $0x28] sm:$0xff]  ;;  %v929_v21 = vld [vmem:[%s1575_s2 + $0x30] sm:$0xff]  ;;  %v930_v22 = vld [vmem:[%s1575_s2 + $0x38] sm:$0xff]  ;;  %s815_s27 = sshll.u32 %s254_s25, 4  ;;  %s1518_s27 = int_to_ptr.vmem [resolvable:$true] %s815_s27 }
  0x3d   : > { %v1390_v1 = vld [vmem:[%s262_s10] sm:$0xff]  ;;  %v1392_v2 = vld [vmem:[%s262_s10 + $0x8] sm:$0xff]  ;;  %v1394_v3 = vld [vmem:[%s262_s10 + $0x10] sm:$0xff]  ;;  %282 = vperm.xlu0 %1141, %v272_v10   ;;  %s1523_s11 = scalar_lea.hbm %s1578_s5, %s949_s29  ;;  %s1171_s13 = scalar_lea.vmem %s1518_s27, 512 }
  0x3e   : > { %v1038_v4 = vpack.c.bf16 %v1392_v2, %v1390_v1  ;;  %v1398_v5 = vld [vmem:[%s262_s10 + $0x18] sm:$0xff]  ;;  %292 = vperm.xlu1 %1142, %v274_v11   ;;  %v935_v23 = vld [vmem:[%s1577_s4 + $0x20] sm:$0xff]  ;;  %v936_v24 = vld [vmem:[%s1577_s4 + $0x28] sm:$0xff]  ;;  %p1172_p8 = scmp.ne.s32.totalorder %s1518_s27, %s1171_s13  ;;  %p1590_p10 = scmp.ne.s32.totalorder %s1583_s28, 0 }
  0x3f   : > { %v1042_v7 = vpack.c.bf16 %v1398_v5, %v1394_v3  ;;  %v937_v25 = vld [vmem:[%s1577_s4 + $0x30] sm:$0xff]  ;;  %v938_v26 = vld [vmem:[%s1577_s4 + $0x38] sm:$0xff]  ;;  %v397_v27 = vld [vmem:[#allocation2] sm:$0xff]  ;;  %s1259_s14 = smov [#allocation5]  }
  0x40   : > { %1039 = vmatprep.subr.bf16.mxu0 %v1038_v4  ;;  %1004 = vmatprep.mubr.msk.f32.mxu1 %vm295_vm0, %v397_v27  ;;  %v398_v46 = vld [vmem:[#allocation2 + $0x8] sm:$0xff]  ;;  %v399_v47 = vld [vmem:[#allocation2 + $0x10] sm:$0xff]  ;;  %v400_v48 = vld [vmem:[#allocation2 + $0x18] sm:$0xff]  ;;  %p1173_p11 = pnand %p1172_p8, %p1590_p10  ;;  %s1175_s15 = sshll.u32 %s1259_s14, 4  ;;  %s1176_s15 = int_to_ptr.vmem [resolvable:$false] %s1175_s15 }
  0x41   : > { %1041 = vmatpush3.bf16.msra.mxu0 %v1038_v4  ;;  %407 = vperm.xlu0 %1141, %v401_v13   ;;  %v923_v49 = vld [vmem:[%s1574_s1 + $0x20] sm:$0xff]  ;;  %v926_v10 = vld [vmem:[%s1574_s1 + $0x38] sm:$0xff]  ;;  %s1177_s10 = scalar_lea.vmem %s1176_s15, 1024  ;;  %p1178_p1 = scmp.lt.s32.totalorder %s1518_s27, %s1176_s15 }
  0x42   : > { %1043 = vmatprep.subr.bf16.mxu0 %v1042_v7  ;;  %412 = vperm.xlu1 %1142, %v402_v15   ;;  %v662_v11 = vld [vmem:[#allocation2 + $0x20] sm:$0xff]  ;;  %p1174_p13 = pneg %p1173_p11  ;;  %p1179_p3 = scmp.lt.s32.totalorder %s1177_s10, %s1171_s13 }
  0x44   : > { %p1180_p5 = por %p1179_p3, %p1178_p1 }
  0x45   : > { %1045 = vmatpush3.bf16.msra.mxu0 %v1042_v7  ;;  %417 = vperm.xlu0 %1141, %v403_v17  }
  0x46   : > { %422 = vperm.xlu1 %1142, %v404_v18   ;;  %p1181_p6 = pnand %p1180_p5, %p1174_p13 }
  0x48   : > { %991 = vmatmul.mubr.msk.f32.vlgmr.msra.gmra.mrb[0].mxu0 %vm295_vm0, %v268_v12 }
  0x49   : > { %993 = vmatprep.mubr.msk.f32.mxu0 %vm295_vm0, %v269_v14  ;;  %542 = vperm.xlu0 %1141, %v927_v19  }
  0x4a   : > { %547 = vperm.xlu1 %1142, %v928_v20  }
  0x4c   : > { %994 = vmatmul.mubr.msk.f32.gmra.mrb[2].mxu0 %vm295_vm0, %v270_v16 }
  0x4d   : > { %552 = vperm.xlu0 %1141, %v929_v21   ;;  %1018 = vmatprep.mubr.msk.f32.mxu0 %vm295_vm0, %v923_v49 }
  0x4e   : > { %557 = vperm.xlu1 %1142, %v930_v22  }
  0x51   : > { %673 = vperm.xlu0 %1141, %v935_v23  }
  0x52   : > { %678 = vperm.xlu1 %1142, %v936_v24  }
  0x55   : > { %683 = vperm.xlu0 %1141, %v937_v25  }
  0x56   : > { %688 = vperm.xlu1 %1142, %v938_v26  }
  0xb8   : > { %v278_v28 = vpop.permute.xlu0 %277 }
  0xb9   : > { %v288_v29 = vpop.permute.xlu1 %287 }
  0xbc   : > { %v283_v30 = vpop.permute.xlu0 %282 }
  0xbd   : > { %v293_v36 = vpop.permute.xlu1 %292 }
  0xc0   : > { %v408_v51 = vpop.permute.xlu0 %407 }
  0xc1   : > { %v413_v50 = vpop.permute.xlu1 %412 }
  0xc4   : > { %v418_v60 = vpop.permute.xlu0 %417 }
  0xc5   : > { %v423_v57 = vpop.permute.xlu1 %422 }
  0xc8   : > { %v543_v13 = vpop.permute.xlu0 %542 }
  0xc9   : > { %v548_v12 = vpop.permute.xlu1 %547 }
  0xcc   : > { %v553_v22 = vpop.permute.xlu0 %552 }
  0xcd   : > { %v558_v19 = vpop.permute.xlu1 %557 }
 0x11b   : > { %v992_v31 = vpop.f32.mrb[0].mxu0 }
 0x11c   : > { %v380_v32 = vadd.f32 %v992_v31, %v283_v30  ;;  %v374_v33 = vpop.f32.mrb[1].mxu0  ;;  %v663_v30 = vld [vmem:[#allocation2 + $0x28] sm:$0xff]  ;;  %v664_v31 = vld [vmem:[#allocation2 + $0x30] sm:$0xff] }
 0x11d   : > { %v375_v34 = vadd.f32 %v374_v33, %v278_v28  ;;  %v679_v33 = vpop.permute.xlu1 %678 }
 0x11e   : > { %v394_v35 = vmax.f32 %v380_v32, 0.0  ;;  %v665_v32 = vld [vmem:[#allocation2 + $0x38] sm:$0xff] }
 0x11f   : > { %v393_v37 = vmax.f32 %v375_v34, 0.0  ;;  %v995_v38 = vpop.f32.mrb[2].mxu0  ;;  %v674_v34 = vpop.permute.xlu0 %673 }
 0x120   : > { %v390_v39 = vadd.f32 %v995_v38, %v293_v36  ;;  %v384_v40 = vpop.f32.mrb[3].mxu0 }
 0x121   : > { %v385_v41 = vadd.f32 %v384_v40, %v288_v29  ;;  %v1046_v42 = vpack.c.bf16 %v394_v35, %v393_v37  ;;  %v689_v40 = vpop.permute.xlu1 %688 }
 0x122   : > { %v396_v43 = vmax.f32 %v390_v39, 0.0 }
 0x123   : > { %v395_v44 = vmax.f32 %v385_v41, 0.0  ;;  %1047 = vmatprep.subr.bf16.mxu1 %v1046_v42 }
 0x124   : > { %1049 = vmatpush3.bf16.msra.mxu1 %v1046_v42 }
 0x125   : > { %v1050_v45 = vpack.c.bf16 %v396_v43, %v395_v44  ;;  %v684_v43 = vpop.permute.xlu0 %683 }
 0x127   : > { %1051 = vmatprep.subr.bf16.mxu1 %v1050_v45 }
 0x128   : > { %1053 = vmatpush3.bf16.msra.mxu1 %v1050_v45 }
 0x12b   : > { %1005 = vmatmul.mubr.msk.f32.vlgmr.msra.gmra.mrb[0].mxu1 %vm295_vm0, %v398_v46 }
 0x12c   : > { %1007 = vmatprep.mubr.msk.f32.mxu1 %vm295_vm0, %v399_v47 }
 0x12f   : > { %1008 = vmatmul.mubr.msk.f32.gmra.mrb[2].mxu1 %vm295_vm0, %v400_v48 }
 0x130   : > { %1032 = vmatprep.mubr.msk.f32.mxu1 %vm295_vm0, %v662_v11 }
 0x1fe   : > { %v1006_v52 = vpop.f32.mrb[0].mxu1 }
 0x1ff   : > { %v509_v53 = vadd.f32 %v1006_v52, %v413_v50  ;;  %v503_v54 = vpop.f32.mrb[1].mxu1 }
 0x200   : > { %v504_v55 = vadd.f32 %v503_v54, %v408_v51 }
 0x201   : > { %v1475_v56 = vadd.f32 %v509_v53, %v1392_v2 }
 0x202   : > { %v1478_v58 = vadd.f32 %v504_v55, %v1390_v1  ;;  %v1009_v59 = vpop.f32.mrb[2].mxu1 }
 0x203   : > { %v527_v61 = vmax.f32 %v1475_v56, 0.0  ;;  %v519_v62 = vadd.f32 %v1009_v59, %v423_v57  ;;  %v513_v63 = vpop.f32.mrb[3].mxu1 }
 0x204   : > { %v526_v0 = vmax.f32 %v1478_v58, 0.0  ;;  %v514_v4 = vadd.f32 %v513_v63, %v418_v60 }
 0x205   : > { %v1483_v6 = vadd.f32 %v519_v62, %v1398_v5  ;;  %v924_v5 = vld [vmem:[%s1574_s1 + $0x28] sm:$0xff] }
 0x206   : > { %v1486_v7 = vadd.f32 %v514_v4, %v1394_v3  ;;  %v1054_v2 = vpack.c.bf16 %v527_v61, %v526_v0  ;;  %v925_v3 = vld [vmem:[%s1574_s1 + $0x30] sm:$0xff] }
 0x207   : > { %v529_v8 = vmax.f32 %v1483_v6, 0.0 }
 0x208   : > { %v528_v1 = vmax.f32 %v1486_v7, 0.0  ;;  %1055 = vmatprep.subr.bf16.mxu0 %v1054_v2 }
 0x209   : > { %1057 = vmatpush3.bf16.msra.mxu0 %v1054_v2 }
 0x20a   : > { %v1058_v9 = vpack.c.bf16 %v529_v8, %v528_v1 }
 0x20c   : > { %1059 = vmatprep.subr.bf16.mxu0 %v1058_v9 }
 0x20d   : > { %1061 = vmatpush3.bf16.msra.mxu0 %v1058_v9 }
 0x210   : > { %1019 = vmatmul.mubr.msk.f32.vlgmr.msra.gmra.mrb[4].mxu0 %vm295_vm0, %v924_v5 }
 0x211   : > { %1021 = vmatprep.mubr.msk.f32.mxu0 %vm295_vm0, %v925_v3 }
 0x214   : > { %1022 = vmatmul.mubr.msk.f32.gmra.mrb[6].mxu0 %vm295_vm0, %v926_v10 }
 0x2e3   : > { %v1020_v14 = vpop.f32.mrb[4].mxu0 }
 0x2e4   : > { %v644_v15 = vadd.f32 %v1020_v14, %v548_v12  ;;  %v638_v16 = vpop.f32.mrb[5].mxu0 }
 0x2e5   : > { %v639_v17 = vadd.f32 %v638_v16, %v543_v13 }
 0x2e6   : > { %v658_v18 = vmax.f32 %v644_v15, 0.0 }
 0x2e7   : > { %v657_v20 = vmax.f32 %v639_v17, 0.0  ;;  %v1023_v21 = vpop.f32.mrb[6].mxu0 }
 0x2e8   : > { %v654_v23 = vadd.f32 %v1023_v21, %v558_v19  ;;  %v648_v24 = vpop.f32.mrb[7].mxu0 }
 0x2e9   : > { %v1062_v25 = vpack.c.bf16 %v658_v18, %v657_v20  ;;  %v649_v26 = vadd.f32 %v648_v24, %v553_v22 }
 0x2ea   : > { %v660_v27 = vmax.f32 %v654_v23, 0.0 }
 0x2eb   : > { %v659_v28 = vmax.f32 %v649_v26, 0.0  ;;  %1063 = vmatprep.subr.bf16.mxu1 %v1062_v25 }
 0x2ec   : > { %1065 = vmatpush3.bf16.msra.mxu1 %v1062_v25 }
 0x2ed   : > { %v1066_v29 = vpack.c.bf16 %v660_v27, %v659_v28 }
 0x2ef   : > { %1067 = vmatprep.subr.bf16.mxu1 %v1066_v29 }
 0x2f0   : > { %1069 = vmatpush3.bf16.msra.mxu1 %v1066_v29 }
 0x2f3   : > { %1033 = vmatmul.mubr.msk.f32.vlgmr.msra.gmra.mrb[4].mxu1 %vm295_vm0, %v663_v30 }
 0x2f4   : > { %1035 = vmatprep.mubr.msk.f32.mxu1 %vm295_vm0, %v664_v31 }
 0x2f7   : > { %1036 = vmatmul.mubr.msk.f32.gmra.mrb[6].mxu1 %vm295_vm0, %v665_v32 }
 0x3c6   : > { %v1034_v35 = vpop.f32.mrb[4].mxu1 }
 0x3c7   : > { %v775_v36 = vadd.f32 %v1034_v35, %v679_v33  ;;  %v769_v37 = vpop.f32.mrb[5].mxu1 }
 0x3c8   : > { %v770_v38 = vadd.f32 %v769_v37, %v674_v34 }
 0x3c9   : > { %v789_v39 = vadd.f32 %v775_v36, %v527_v61 }
 0x3ca   : > { %v788_v41 = vadd.f32 %v770_v38, %v526_v0  ;;  %v1037_v42 = vpop.f32.mrb[6].mxu1 }
 0x3cb   : > { %v793_v44 = vmax.f32 %v789_v39, 0.0  ;;  %v785_v45 = vadd.f32 %v1037_v42, %v689_v40  ;;  %v779_v46 = vpop.f32.mrb[7].mxu1 }
 0x3cc   : > { %v792_v47 = vmax.f32 %v788_v41, 0.0  ;;  %v780_v48 = vadd.f32 %v779_v46, %v684_v43 }
 0x3cd   : > { %797 = vst [vmem:[%s254_s25 + $0x8] sm:$0xff] %v793_v44  ;;  %v791_v49 = vadd.f32 %v785_v45, %v529_v8 }
 0x3ce   : > { %796 = vst [vmem:[%s254_s25] sm:$0xff] %v792_v47  ;;  %v790_v50 = vadd.f32 %v780_v48, %v528_v1 }
 0x3cf   : > { %v795_v51 = vmax.f32 %v791_v49, 0.0 }
 0x3d0   : > { %v794_v52 = vmax.f32 %v790_v50, 0.0 }
 0x3d1   : > { %799 = vst [vmem:[%s254_s25 + $0x18] sm:$0xff] %v795_v51 }
 0x3d2   : > { %798 = vst [vmem:[%s254_s25 + $0x10] sm:$0xff] %v794_v52 }
 0x3d3   : > { %1184 = shalt.err (!%p1181_p6)
}
 0x3d4   : > { %s1185_s7 = scalar_lea.hbm %s1523_s11, 512  ;;  %s1189_s17 = scalar_lea.hbm %s1578_s5, 1024 }
 0x3d5   : > { %p1186_p7 = scmp.ne.s32.totalorder %s1523_s11, %s1185_s7  ;;  %p1190_p0 = scmp.lt.u32.totalorder %s1523_s11, %s1578_s5 }
 0x3d6   : > { %p1191_p2 = scmp.lt.u32.totalorder %s1189_s17, %s1185_s7  ;;  %p1193_p8 = scmp.lt.u32.totalorder %s1185_s7, %s1523_s11 }
 0x3d7   : > { %p1187_p9 = pnand %p1186_p7, %p1590_p10 }
 0x3d8   : > { %p1192_p4 = por %p1191_p2, %p1190_p0 }
 0x3d9   : > { %p1188_p12 = pneg %p1187_p9 }
 0x3da   : > { %p1194_p11 = por %p1193_p8, %p1192_p4 }
 0x3dc   : > { %p1195_p13 = pnand %p1194_p11, %p1188_p12 }
 0x3de   : > { %1198 = shalt.err (!%p1195_p13)
}
 0x3df   : > { %s1260_s29 = smov 128   ;;  %s1261_s9 = smov 8  }
 0x3e0   : > { %1074 = dma.vmem_to_hbm [thread:$0]  (%p1590_p10), %s1518_s27, 512, %s1523_s11, %s1527_s21, %s1260_s29, %s1260_s29, %s1261_s9  }
 0x3e1 PF: > { %p1086_p1 = scmp.ge.s32.totalorder %s1253_s23, 2  ;;  %s830_s12 = sand.u32 1, %s1233_s18  }
 0x3e2   : > { %p1591_p3 = scmp.ne.s32.totalorder %s1584_s30, 0  ;;  %s831_s13 = scalar_lea.sflag [#allocation4], %s830_s12 }
 0x3e4   : > { %p1081_p5 = pnand %p1086_p1, %p1591_p3 }
 0x3e6   : > { %1228 = dma.done.wait (!%p1081_p5), %s831_s13, 512  }
 0x3e7   : > { %1230 = vsyncadd (!%p1081_p5), %s831_s13, 4294966784  ;;  %s19_s23 = sadd.s32 1, %s1253_s23   ;;  %s1592_s18 = smov %s1237_s19 }
 0x3e8   : > { %p16_p6 = scmp.ge.s32.totalorder %s19_s23, 4   ;;  %s1593_s19 = smov %s1241_s20 }
 0x3e9   : > { %s1594_s20 = smov %s1345_s6  ;;  %s1595_s21 = smov %s1249_s22 }
 0x3ea   : > { %s1596_s22 = smov %s1598_s26  ;;  %18 = sbr.rel (!%p16_p6) target bundleno = 5 (0x5), region = 84 }
 0x3f1   :  { %836 = vsyncpa [#allocation3], 1 }
 0x3f2   :  { %838 = vsyncpa [#allocation3 + $0x1], 1 }
 0x3f3   :  { %839 = vsyncpa [#allocation4], 1 }
 0x3f4   :  { %841 = vsyncpa [#allocation4 + $0x1], 1 }

</bundles_post_ra>
